<compile_context>
chip_gen: v7x
topology: tpu7x:2x2x1
jax: 0.10.0
libtpu: 0.0.40
codegen_flags: <defaults>
</compile_context>

<pallas_src>
import functools

import jax
import jax.numpy as jnp
from jax.experimental import pallas as pl
from jax.experimental.pallas import tpu as pltpu

BN_EPS = 1e-3
LANE = 128
SUBLANE = 8
MAX_TILE_B = 8192               # batch-tile row cap (footprint-derived below)
VMEM_STREAM_BUDGET = 24 << 20   # target for double-buffered streamed bytes


def _round_up(n, m):
    return -(-n // m) * m


# ---------------------------------------------------------------------------
# Fused path (whole batch in one tile): z, exact centered batch stats,
# folded BN affine, sigmoid, narrow store — a single launch.
# ---------------------------------------------------------------------------
def _fused_kernel(x_ref, xc_ref, w1_ref, w2_ref, g_ref, be_ref, o_ref, *, n_out):
    z = (jnp.dot(x_ref[...], w1_ref[...], preferred_element_type=jnp.float32)
         + jnp.dot(xc_ref[...], w2_ref[...], preferred_element_type=jnp.float32))
    mean = jnp.mean(z, axis=0, keepdims=True)
    zc = z - mean
    var = jnp.mean(zc * zc, axis=0, keepdims=True)      # exact centered variance
    scale = g_ref[...] * jax.lax.rsqrt(var + BN_EPS)
    y = zc * scale + be_ref[...]
    o_ref[...] = jax.nn.sigmoid(y)[:, :n_out]            # narrow (masked) store


# ---------------------------------------------------------------------------
# Pass 1 (multi-tile): per-tile partial sum / sum-of-squares of
# z0 = x@W1 + x_cat@W2 (bias omitted — it cancels under batch-stat BN).
# "parallel" grid axis → megacore-friendly on v7x.
# ---------------------------------------------------------------------------
def _stats_kernel(x_ref, xc_ref, w1_ref, w2_ref, sum_ref, sq_ref,
                  *, batch, tile_b, need_mask):
    z = (jnp.dot(x_ref[...], w1_ref[...], preferred_element_type=jnp.float32)
         + jnp.dot(xc_ref[...], w2_ref[...], preferred_element_type=jnp.float32))
    if need_mask:
        # Ragged last tile: rows >= batch hold undefined data; zero them so
        # they do not pollute the statistics (jnp.where is NaN/Inf safe).
        row = (pl.program_id(0) * tile_b
               + jax.lax.broadcasted_iota(jnp.int32, z.shape, 0))
        z = jnp.where(row < batch, z, 0.0)
    sum_ref[...] = jnp.sum(z, axis=0, keepdims=True)[None]
    sq_ref[...] = jnp.sum(z * z, axis=0, keepdims=True)[None]


# ---------------------------------------------------------------------------
# Pass 2 (multi-tile): recompute z0, fold BN scale/shift in-kernel from the
# pinned moment vectors (a few VPU ops, hidden under the memory bound),
# apply sigmoid and do a narrow HBM store.
# Two-moment variance uses a max(...,0) clamp; fine at normal scales.
# ---------------------------------------------------------------------------
def _apply_kernel(x_ref, xc_ref, w1_ref, w2_ref, zsum_ref, zsq_ref,
                  g_ref, be_ref, o_ref, *, batch, n_out):
    z = (jnp.dot(x_ref[...], w1_ref[...], preferred_element_type=jnp.float32)
         + jnp.dot(xc_ref[...], w2_ref[...], preferred_element_type=jnp.float32))
    inv_b = 1.0 / batch
    mean = zsum_ref[...] * inv_b
    var = jnp.maximum(zsq_ref[...] * inv_b - mean * mean, 0.0)
    scale = g_ref[...] * jax.lax.rsqrt(var + BN_EPS)
    shift = be_ref[...] - mean * scale
    y = z * scale + shift
    o_ref[...] = jax.nn.sigmoid(y)[:, :n_out]


def logistic_regression_forward(x, x_cat, w, b, gamma, beta,
                                *, max_tile_b=MAX_TILE_B):
    """x: (B, n_in), x_cat: (B, n_cat), w: (n_out, n_in + n_cat),
    b / gamma / beta: (n_out,).  Returns sigmoid(BN(Linear(cat(x, x_cat))))."""
    del b  # linear bias cancels exactly under training-mode BatchNorm
    x = x.astype(jnp.float32)
    x_cat = x_cat.astype(jnp.float32)
    B, n_in = x.shape
    n_cat = x_cat.shape[1]
    n_out = w.shape[0]
    n_pad = _round_up(n_out, LANE)    # lane-dense compute width inside VMEM

    # Split + transpose + lane-pad the parameters (tiny one-off glue).
    w = w.astype(jnp.float32)
    w1 = jnp.zeros((n_in, n_pad), jnp.float32).at[:, :n_out].set(w[:, :n_in].T)
    w2 = jnp.zeros((n_cat, n_pad), jnp.float32).at[:, :n_out].set(w[:, n_in:].T)
    g_p = jnp.zeros((1, n_pad), jnp.float32).at[0, :n_out].set(gamma.astype(jnp.float32))
    be_p = jnp.zeros((1, n_pad), jnp.float32).at[0, :n_out].set(beta.astype(jnp.float32))

    # VMEM lane-pads every last dim to 128, so budget with the padded widths
    # (x, x_cat and the output tile are the streamed, double-buffered arrays).
    row_bytes = (_round_up(n_in, LANE) + _round_up(n_cat, LANE) + n_pad) * 4
    tile_b = min(max_tile_b, VMEM_STREAM_BUDGET // (2 * row_bytes))
    tile_b = max(SUBLANE, (tile_b // SUBLANE) * SUBLANE)
    param_bytes = (n_in + n_cat + 8) * n_pad * 4

    # ---- fused single-tile path --------------------------------------------
    if B <= tile_b:
        vmem_bytes = int(2 * _round_up(B, SUBLANE) * row_bytes
                         + param_bytes + (2 << 20))
        return pl.pallas_call(
            functools.partial(_fused_kernel, n_out=n_out),
            out_shape=jax.ShapeDtypeStruct((B, n_out), jnp.float32),
            grid=(1,),
            in_specs=[pl.BlockSpec((B, n_in), lambda i: (0, 0)),
                      pl.BlockSpec((B, n_cat), lambda i: (0, 0)),
                      pl.BlockSpec((n_in, n_pad), lambda i: (0, 0)),
                      pl.BlockSpec((n_cat, n_pad), lambda i: (0, 0)),
                      pl.BlockSpec((1, n_pad), lambda i: (0, 0)),
                      pl.BlockSpec((1, n_pad), lambda i: (0, 0))],
            out_specs=pl.BlockSpec((B, n_out), lambda i: (0, 0)),
            compiler_params=pltpu.CompilerParams(
                dimension_semantics=("arbitrary",),
                vmem_limit_bytes=vmem_bytes),
        )(x, x_cat, w1, w2, g_p, be_p)

    # ---- two-pass path ------------------------------------------------------
    num_tiles = -(-B // tile_b)
    need_mask = (B % tile_b) != 0
    vmem_bytes = int(2 * tile_b * row_bytes + param_bytes + (2 << 20))

    x_spec = pl.BlockSpec((tile_b, n_in), lambda i: (i, 0))
    xc_spec = pl.BlockSpec((tile_b, n_cat), lambda i: (i, 0))
    # Parameters pinned: same block every grid step -> DMA'd once, stay resident.
    w1_spec = pl.BlockSpec((n_in, n_pad), lambda i: (0, 0))
    w2_spec = pl.BlockSpec((n_cat, n_pad), lambda i: (0, 0))
    vec_spec = pl.BlockSpec((1, n_pad), lambda i: (0, 0))
    part_spec = pl.BlockSpec((1, 1, n_pad), lambda i: (i, 0, 0))

    # pass 1: per-tile partial moments (parallel grid axis, no accumulator)
    psum, psq = pl.pallas_call(
        functools.partial(_stats_kernel, batch=B, tile_b=tile_b,
                          need_mask=need_mask),
        out_shape=(jax.ShapeDtypeStruct((num_tiles, 1, n_pad), jnp.float32),
                   jax.ShapeDtypeStruct((num_tiles, 1, n_pad), jnp.float32)),
        grid=(num_tiles,),
        in_specs=[x_spec, xc_spec, w1_spec, w2_spec],
        out_specs=(part_spec, part_spec),
        compiler_params=pltpu.CompilerParams(
            dimension_semantics=("parallel",),
            vmem_limit_bytes=vmem_bytes),
    )(x, x_cat, w1, w2)

    zsum = jnp.sum(psum, axis=0)   # (1, n_pad) — tiny XLA reduce
    zsq = jnp.sum(psq, axis=0)

    # pass 2: recompute z0, fold BN affine in-kernel, sigmoid, narrow store
    out = pl.pallas_call(
        functools.partial(_apply_kernel, batch=B, n_out=n_out),
        out_shape=jax.ShapeDtypeStruct((B, n_out), jnp.float32),
        grid=(num_tiles,),
        in_specs=[x_spec, xc_spec, w1_spec, w2_spec,
                  vec_spec, vec_spec, vec_spec, vec_spec],
        out_specs=pl.BlockSpec((tile_b, n_out), lambda i: (i, 0)),
        compiler_params=pltpu.CompilerParams(
            dimension_semantics=("parallel",),
            vmem_limit_bytes=vmem_bytes),
    )(x, x_cat, w1, w2, zsum, zsq, g_p, be_p)
    return out


def _reference(x, x_cat, w, b, gamma, beta):
    h = jnp.concatenate([x, x_cat], axis=1)
    z = h @ w.T + b
    mean = jnp.mean(z, axis=0, keepdims=True)
    var = jnp.mean((z - mean) ** 2, axis=0, keepdims=True)
    y = gamma * (z - mean) * jax.lax.rsqrt(var + BN_EPS) + beta
    return jax.nn.sigmoid(y)


if __name__ == "__main__":
    n_in, n_cat, n_out = 24, 8, 16
    F = n_in + n_cat

    key = jax.random.PRNGKey(0)
    kx, kc, kw, kb, kx2, kc2 = jax.random.split(key, 6)

    # Deterministic parameter init mimicking nn.Linear defaults:
    # U(-1/sqrt(F), 1/sqrt(F)) for weight and bias.
    bound = 1.0 / (F ** 0.5)
    w = jax.random.uniform(kw, (n_out, F), minval=-bound, maxval=bound,
                           dtype=jnp.float32)
    b = jax.random.uniform(kb, (n_out,), minval=-bound, maxval=bound,
                           dtype=jnp.float32)
    # BatchNorm1d affine params at init: weight = 1, bias = 0.
    gamma = jnp.ones((n_out,), dtype=jnp.float32)
    beta = jnp.zeros((n_out,), dtype=jnp.float32)

    # Case 1: small batch -> fused single-launch path.
    B1 = 8
    x1 = jax.random.normal(kx, (B1, n_in), dtype=jnp.float32)
    xc1 = jax.random.normal(kc, (B1, n_cat), dtype=jnp.float32)
    out1 = jax.block_until_ready(
        logistic_regression_forward(x1, xc1, w, b, gamma, beta))
    ref1 = _reference(x1, xc1, w, b, gamma, beta)
    assert out1.shape == (B1, n_out)
    assert jnp.allclose(out1, ref1, atol=1e-5, rtol=1e-5)

    # Case 2: forced multi-tile + ragged trailing tile -> two-pass path.
    B2 = 20
    x2 = jax.random.normal(kx2, (B2, n_in), dtype=jnp.float32)
    xc2 = jax.random.normal(kc2, (B2, n_cat), dtype=jnp.float32)
    out2 = jax.block_until_ready(
        logistic_regression_forward(x2, xc2, w, b, gamma, beta, max_tile_b=8))
    ref2 = _reference(x2, xc2, w, b, gamma, beta)
    assert out2.shape == (B2, n_out)
    assert jnp.allclose(out2, ref2, atol=1e-5, rtol=1e-5)

    print("KERNEL_OK")
</pallas_src>

<mosaic_0001>
module attributes {stable_mosaic.version = 11 : i64} {
  func.func @_fused_kernel(%arg0: i32, %arg1: memref<8x24xf32, #tpu.memory_space<vmem>>, %arg2: memref<8x8xf32, #tpu.memory_space<vmem>>, %arg3: memref<24x128xf32, #tpu.memory_space<vmem>>, %arg4: memref<8x128xf32, #tpu.memory_space<vmem>>, %arg5: memref<1x128xf32, #tpu.memory_space<vmem>>, %arg6: memref<1x128xf32, #tpu.memory_space<vmem>>, %arg7: memref<8x16xf32, #tpu.memory_space<vmem>>) attributes {dimension_semantics = [#tpu.dimension_semantics<arbitrary>], iteration_bounds = array<i64: 1>, scalar_prefetch = 0 : i64, scratch_operands = 0 : i64, tpu.core_type = #tpu.core_type<tc>, window_params = [{pipeline_mode = #tpu.pipeline_mode<synchronous>, transform_indices = @transform_0, window_bounds = array<i64: 8, 24>}, {pipeline_mode = #tpu.pipeline_mode<synchronous>, transform_indices = @transform_1, window_bounds = array<i64: 8, 8>}, {pipeline_mode = #tpu.pipeline_mode<synchronous>, transform_indices = @transform_2, window_bounds = array<i64: 24, 128>}, {pipeline_mode = #tpu.pipeline_mode<synchronous>, transform_indices = @transform_3, window_bounds = array<i64: 8, 128>}, {pipeline_mode = #tpu.pipeline_mode<synchronous>, transform_indices = @transform_4, window_bounds = array<i64: 1, 128>}, {pipeline_mode = #tpu.pipeline_mode<synchronous>, transform_indices = @transform_5, window_bounds = array<i64: 1, 128>}, {pipeline_mode = #tpu.pipeline_mode<synchronous>, transform_indices = @transform_6, window_bounds = array<i64: 8, 16>}]} {
    %c0 = arith.constant 0 : index
    %c0_0 = arith.constant 0 : index
    %0 = vector.load %arg1[%c0, %c0_0] : memref<8x24xf32, #tpu.memory_space<vmem>>, vector<8x24xf32>
    %c0_1 = arith.constant 0 : index
    %c0_2 = arith.constant 0 : index
    %1 = vector.load %arg3[%c0_1, %c0_2] : memref<24x128xf32, #tpu.memory_space<vmem>>, vector<24x128xf32>
    %cst = arith.constant dense<0.000000e+00> : vector<8x128xf32>
    %2 = tpu.matmul %0, %1, %cst {dimension_numbers = #tpu.dot_dimension_numbers<[1], [0], [0], [1], [0, 0, 1, 1], [], []>} : vector<8x24xf32>, vector<24x128xf32>, vector<8x128xf32> -> vector<8x128xf32>
    %c0_3 = arith.constant 0 : index
    %c0_4 = arith.constant 0 : index
    %3 = vector.load %arg2[%c0_3, %c0_4] : memref<8x8xf32, #tpu.memory_space<vmem>>, vector<8x8xf32>
    %c0_5 = arith.constant 0 : index
    %c0_6 = arith.constant 0 : index
    %4 = vector.load %arg4[%c0_5, %c0_6] : memref<8x128xf32, #tpu.memory_space<vmem>>, vector<8x128xf32>
    %cst_7 = arith.constant dense<0.000000e+00> : vector<8x128xf32>
    %5 = tpu.matmul %3, %4, %cst_7 {dimension_numbers = #tpu.dot_dimension_numbers<[1], [0], [0], [1], [0, 0, 1, 1], [], []>} : vector<8x8xf32>, vector<8x128xf32>, vector<8x128xf32> -> vector<8x128xf32>
    %6 = arith.addf %2, %5 : vector<8x128xf32>
    %cst_8 = arith.constant dense<0.000000e+00> : vector<128xf32>
    %7 = vector.multi_reduction <add>, %6, %cst_8 [0] : vector<8x128xf32> to vector<128xf32>
    %8 = vector.shape_cast %7 : vector<128xf32> to vector<1x128xf32>
    %cst_9 = arith.constant 8.000000e+00 : f32
    %9 = vector.broadcast %cst_9 : f32 to vector<1x128xf32>
    %10 = arith.divf %8, %9 : vector<1x128xf32>
    %11 = vector.broadcast %10 : vector<1x128xf32> to vector<8x128xf32>
    %12 = arith.subf %6, %11 : vector<8x128xf32>
    %13 = arith.mulf %12, %12 : vector<8x128xf32>
    %cst_10 = arith.constant dense<0.000000e+00> : vector<128xf32>
    %14 = vector.multi_reduction <add>, %13, %cst_10 [0] : vector<8x128xf32> to vector<128xf32>
    %15 = vector.shape_cast %14 : vector<128xf32> to vector<1x128xf32>
    %cst_11 = arith.constant 8.000000e+00 : f32
    %16 = vector.broadcast %cst_11 : f32 to vector<1x128xf32>
    %17 = arith.divf %15, %16 : vector<1x128xf32>
    %c0_12 = arith.constant 0 : index
    %c0_13 = arith.constant 0 : index
    %18 = vector.load %arg5[%c0_12, %c0_13] : memref<1x128xf32, #tpu.memory_space<vmem>>, vector<1x128xf32>
    %cst_14 = arith.constant 1.000000e-03 : f32
    %19 = vector.broadcast %cst_14 : f32 to vector<1x128xf32>
    %20 = arith.addf %17, %19 : vector<1x128xf32>
    %21 = math.rsqrt %20 : vector<1x128xf32>
    %22 = arith.mulf %18, %21 : vector<1x128xf32>
    %23 = vector.broadcast %22 : vector<1x128xf32> to vector<8x128xf32>
    %24 = arith.mulf %12, %23 : vector<8x128xf32>
    %c0_15 = arith.constant 0 : index
    %c0_16 = arith.constant 0 : index
    %25 = vector.load %arg6[%c0_15, %c0_16] : memref<1x128xf32, #tpu.memory_space<vmem>>, vector<1x128xf32>
    %26 = vector.broadcast %25 : vector<1x128xf32> to vector<8x128xf32>
    %27 = arith.addf %24, %26 : vector<8x128xf32>
    %28 = arith.negf %27 : vector<8x128xf32>
    %29 = math.exp %28 : vector<8x128xf32>
    %cst_17 = arith.constant 1.000000e+00 : f32
    %30 = vector.broadcast %cst_17 : f32 to vector<8x128xf32>
    %31 = arith.addf %30, %29 : vector<8x128xf32>
    %32 = arith.divf %30, %31 : vector<8x128xf32>
    %33 = vector.extract_strided_slice %32 {offsets = [0, 0], sizes = [8, 16], strides = [1, 1]} : vector<8x128xf32> to vector<8x16xf32>
    %c0_18 = arith.constant 0 : index
    %c0_19 = arith.constant 0 : index
    %34 = vector.load %arg7[%c0_18, %c0_19] : memref<8x16xf32, #tpu.memory_space<vmem>>, vector<8x16xf32>
    tpu.vector_store %arg7[%c0_18, %c0_19], %33 {strides = array<i32>} : memref<8x16xf32, #tpu.memory_space<vmem>>, vector<8x16xf32>,
    return
  }
  func.func @transform_0(%arg0: i32) -> (i32, i32) {
    %c0_i32 = arith.constant 0 : i32
    %c0_i32_0 = arith.constant 0 : i32
    %c0_i32_1 = arith.constant 0 : i32
    return %c0_i32, %c0_i32_0 : i32, i32
  }
  func.func @transform_1(%arg0: i32) -> (i32, i32) {
    %c0_i32 = arith.constant 0 : i32
    %c0_i32_0 = arith.constant 0 : i32
    %c0_i32_1 = arith.constant 0 : i32
    return %c0_i32, %c0_i32_0 : i32, i32
  }
  func.func @transform_2(%arg0: i32) -> (i32, i32) {
    %c0_i32 = arith.constant 0 : i32
    %c0_i32_0 = arith.constant 0 : i32
    %c0_i32_1 = arith.constant 0 : i32
    return %c0_i32, %c0_i32_0 : i32, i32
  }
  func.func @transform_3(%arg0: i32) -> (i32, i32) {
    %c0_i32 = arith.constant 0 : i32
    %c0_i32_0 = arith.constant 0 : i32
    %c0_i32_1 = arith.constant 0 : i32
    return %c0_i32, %c0_i32_0 : i32, i32
  }
  func.func @transform_4(%arg0: i32) -> (i32, i32) {
    %c0_i32 = arith.constant 0 : i32
    %c0_i32_0 = arith.constant 0 : i32
    %c0_i32_1 = arith.constant 0 : i32
    return %c0_i32, %c0_i32_0 : i32, i32
  }
  func.func @transform_5(%arg0: i32) -> (i32, i32) {
    %c0_i32 = arith.constant 0 : i32
    %c0_i32_0 = arith.constant 0 : i32
    %c0_i32_1 = arith.constant 0 : i32
    return %c0_i32, %c0_i32_0 : i32, i32
  }
  func.func @transform_6(%arg0: i32) -> (i32, i32) {
    %c0_i32 = arith.constant 0 : i32
    %c0_i32_0 = arith.constant 0 : i32
    %c0_i32_1 = arith.constant 0 : i32
    return %c0_i32, %c0_i32_0 : i32, i32
  }
}

</mosaic_0001>

<bundles_post_ra>
// kernel: tpu_custom_call.1
= control target key start
LH: loop header
LB: loop body
LE: loop exit
PB: predicated region body
PF: predicated region fallthrough
CT: control target
= control target key end

     0   :  { %11 = vsyncpa [#allocation3], 0  ;;  %s513_s0 = inlined_call_operand.hbm [shape: f32[8,24], index: 0, kind: input, shape index: {}]   ;;  %s514_s1 = inlined_call_operand.hbm [shape: f32[8,8], index: 1, kind: input, shape index: {}]   ;;  %s515_s2 = inlined_call_operand.hbm [shape: f32[24,128], index: 2, kind: input, shape index: {}]   ;;  %s516_s3 = inlined_call_operand.vmem [shape: f32[8,128], index: 3, kind: input, shape index: {}]   ;;  %s517_s4 = inlined_call_operand.vmem [shape: f32[1,128], index: 4, kind: input, shape index: {}]   ;;  %s518_s5 = inlined_call_operand.vmem [shape: f32[1,128], index: 5, kind: input, shape index: {}]   ;;  %s519_s6 = inlined_call_operand.hbm [shape: f32[8,16], index: 6, kind: output, shape index: {}]  }
   0x1   :  { %12 = vsyncpa [#allocation6], 0 }
   0x2   :  { %13 = vsyncpa [#allocation4], 0  ;;  %s412_s21 = smov [#allocation5]   ;;  %s413_s23 = smov [#allocation2]  }
   0x3   :  { %s30_s22 = sshll.u32 %s412_s21, 4  ;;  %s20_s24 = sshll.u32 %s413_s23, 4  ;;  %s31_s22 = int_to_ptr.vmem [resolvable:$true] %s30_s22  ;;  %s21_s24 = int_to_ptr.vmem [resolvable:$true] %s20_s24 }
   0x4   :  { %s318_s27 = scalar_lea.hbm %s514_s1, 128 }
   0x5   :  { %p319_p0 = scmp.ne.s32.totalorder %s514_s1, %s318_s27  ;;  %p322_p1 = scmp.lt.u32.totalorder %s318_s27, %s514_s1 }
   0x7   :  { %p324_p2 = pnand %p322_p1, %p319_p0 }
   0x9   :  { %327 = shalt.err (!%p324_p2)
}
   0xa   :  { %s328_s8 = scalar_lea.vmem %s31_s22, 128  ;;  %p333_p4 = scmp.lt.s32.totalorder %s31_s22, %s31_s22 }
   0xb   :  { %p329_p3 = scmp.ne.s32.totalorder %s31_s22, %s328_s8  ;;  %p334_p5 = scmp.lt.s32.totalorder %s328_s8, %s328_s8 }
   0xd   :  { %p335_p6 = por %p334_p5, %p333_p4 }
   0xf   :  { %p336_p7 = pnand %p335_p6, %p329_p3 }
  0x11   :  { %339 = shalt.err (!%p336_p7)
}
  0x12   :  { %33 = dma.hbm_to_vmem [thread:$0]  %s514_s1, 128, %s31_s22, [#allocation6]  }
  0x13   :  { %s340_s13 = scalar_lea.hbm %s513_s0, 128 }
  0x14   :  { %p341_p8 = scmp.ne.s32.totalorder %s513_s0, %s340_s13  ;;  %p344_p9 = scmp.lt.u32.totalorder %s340_s13, %s513_s0 }
  0x16   :  { %p346_p10 = pnand %p344_p9, %p341_p8 }
  0x18   :  { %349 = shalt.err (!%p346_p10)
}
  0x19   :  { %s350_s18 = scalar_lea.vmem %s21_s24, 128  ;;  %p355_p12 = scmp.lt.s32.totalorder %s21_s24, %s21_s24 }
  0x1a   :  { %p351_p11 = scmp.ne.s32.totalorder %s21_s24, %s350_s18  ;;  %p356_p13 = scmp.lt.s32.totalorder %s350_s18, %s350_s18 }
  0x1c   :  { %p357_p0 = por %p356_p13, %p355_p12 }
  0x1e   :  { %p358_p1 = pnand %p357_p0, %p351_p11 }
  0x20   :  { %361 = shalt.err (!%p358_p1)
}
  0x21   :  { %23 = dma.hbm_to_vmem [thread:$0]  %s513_s0, 128, %s21_s24, [#allocation3]  }
  0x22   :  { %s414_s20 = smov [#allocation7]   ;;  %s362_s25 = scalar_lea.hbm %s515_s2, 384 }
  0x23   :  { %s39_s21 = sshll.u32 %s414_s20, 4  ;;  %p363_p2 = scmp.ne.s32.totalorder %s515_s2, %s362_s25  ;;  %s40_s21 = int_to_ptr.vmem [resolvable:$true] %s39_s21 }
  0x24   :  { %p366_p3 = scmp.lt.u32.totalorder %s362_s25, %s515_s2 }
  0x26   :  { %p368_p4 = pnand %p366_p3, %p363_p2 }
  0x28   :  { %371 = shalt.err (!%p368_p4)
}
  0x29   :  { %s372_s30 = scalar_lea.vmem %s40_s21, 384  ;;  %p377_p6 = scmp.lt.s32.totalorder %s40_s21, %s40_s21 }
  0x2a   :  { %p373_p5 = scmp.ne.s32.totalorder %s40_s21, %s372_s30  ;;  %p378_p7 = scmp.lt.s32.totalorder %s372_s30, %s372_s30 }
  0x2c   :  { %p379_p8 = por %p378_p7, %p377_p6 }
  0x2e   :  { %p380_p9 = pnand %p379_p8, %p373_p5 }
  0x30   :  { %383 = shalt.err (!%p380_p9)
}
  0x31   :  { %s415_s0 = smov 128   ;;  %s416_s24 = smov 8  }
  0x32   :  { %45 = dma.hbm_to_vmem [thread:$0]  %s515_s2, 384, %s40_s21, [#allocation6], %s415_s0, %s415_s0, %s416_s24  }
  0x33   :  { %406 = dma.done.wait [#allocation3], 128  }
  0x34   :  { %407 = vsyncadd [#allocation3], 4294967168 }
  0x35   :  { %408 = dma.done.wait [#allocation6], 512  }
  0x36   :  { %409 = vsyncadd [#allocation6], 4294966784  ;;  %v417_v0 = vmov 0.0|0.0   ;;  %v418_v1 = vmov 0.0   ;;  %vm419_vm0 = vmmov 0   ;;  %vm67_vm1 = vcmask 64512  }
  0x37   :  { %299 = vmatprep.subr.bf16.mxu0 %v417_v0  ;;  %285 = vmatprep.subr.mxu1 %v418_v1  ;;  %v62_v2 = vld [vmem:[#allocation7] sm:$0xff]  ;;  %v63_v3 = vld [vmem:[#allocation7 + $0x8] sm:$0xff]  ;;  %v66_v4 = vld [vmem:[%s516_s3] sm:$0xff]  ;;  %vm141_vm2 = vcmask 195584   ;;  %v237_v31 = vlaneseq  ;;  %s420_s13 = smov [#allocation8]   ;;  %vm257_vm3 = vcmask 130048  }
  0x38   :  { %287 = vmatprep.mubr.msk.f32.mxu1 %vm419_vm0, %v418_v1  ;;  %296 = vmatprep.mubr.msk.f32.mxu0 %vm419_vm0, %v418_v1  ;;  %v300_v5 = vpack.c.bf16 %v63_v3, %v62_v2  ;;  %v65_v6 = vld [vmem:[#allocation5] sm:$0xff]  ;;  %v64_v7 = vld [vmem:[#allocation7 + $0x10] sm:$0xff]  ;;  %s265_s14 = sshll.u32 %s420_s13, 4  ;;  %s266_s14 = int_to_ptr.vmem [resolvable:$true] %s265_s14 }
  0x39   :  { %286 = vmatpush3.msra.mxu1 %v66_v4  ;;  %v61_v8 = vld [vmem:[#allocation2] sm:$0xff]  ;;  %v238_v32 = vshrl.u32 %v237_v31, 7  ;;  %p389_p11 = scmp.lt.s32.totalorder %s266_s14, %s266_s14 }
  0x3a   :  { %288 = vmatmul.mubr.msk.f32.vlgmr.msra.gmra.mrb[0].mxu1 %vm67_vm1, %v65_v6  ;;  %301 = vmatpush3.bf16.msra.mxu0 %v300_v5  ;;  %v232_v33 = vld [vmem:[%s517_s4] sm:$0x1]  ;;  %s384_s4 = scalar_lea.vmem %s266_s14, 128 }
  0x3b   :  { %294 = vmatprep.subr.mxu0 %v418_v1  ;;  %v239_v34 = vsub.s32 0, %v238_v32  ;;  %v277_v38 = vld [vmem:[%s518_s5] ss:$0 sm:$0xff]  ;;  %p385_p10 = scmp.ne.s32.totalorder %s266_s14, %s384_s4  ;;  %p390_p12 = scmp.lt.s32.totalorder %s384_s4, %s384_s4 }
  0x3d   :  { %p391_p13 = por %p390_p12, %p389_p11 }
  0x3e   :  { %295 = vmatpush3.msra.mxu0 %v64_v7 }
  0x3f   :  { %297 = vmatmul.mubr.msk.f32.vlgmr.msra.gmra.mrb[0].mxu0 %vm141_vm2, %v61_v8  ;;  %p392_p0 = pnand %p391_p13, %p385_p10 }
 0x10d   :  { %v137_v9 = vpop.f32.mrb[0].mxu1 }
 0x10e   :  { %v289_v10 = vpop.f32.mrb[1].mxu1 }
 0x112   :  { %v211_v11 = vpop.f32.mrb[0].mxu0 }
 0x113   :  { %v212_v12 = vadd.f32 %v211_v11, %v137_v9  ;;  %v298_v13 = vpop.f32.mrb[1].mxu0 }
 0x115   :  { %v215_v14 = vrot.slane %v212_v12, 4 }
 0x117   :  { %v216_v15 = vadd.f32 %v215_v14, %v212_v12 }
 0x119   :  { %v217_v16 = vrot.slane %v216_v15, 2 }
 0x11b   :  { %v218_v17 = vadd.f32 %v217_v16, %v216_v15 }
 0x11d   :  { %v219_v18 = vrot.slane %v218_v17, 1 }
 0x11f   :  { %v220_v19 = vadd.f32 %v219_v18, %v218_v17 }
 0x121   :  { %v222_v20 = vmul.f32 0.125, %v220_v19 }
 0x123   :  { %v223_v21 = vsub.f32 %v212_v12, %v222_v20 }
 0x125   :  { %v224_v22 = vmul.f32 %v223_v21, %v223_v21 }
 0x127   :  { %v225_v23 = vrot.slane %v224_v22, 4 }
 0x129   :  { %v226_v24 = vadd.f32 %v225_v23, %v224_v22 }
 0x12b   :  { %v227_v25 = vrot.slane %v226_v24, 2 }
 0x12d   :  { %v228_v26 = vadd.f32 %v227_v25, %v226_v24 }
 0x12f   :  { %v229_v27 = vrot.slane %v228_v26, 1 }
 0x131   :  { %v230_v28 = vadd.f32 %v229_v27, %v228_v26 }
 0x133   :  { %v231_v29 = vmul.f32 0.125, %v230_v28 }
 0x135   :  { %v233_v30 = vadd.f32 0.001, %v231_v29 }
 0x137   :  { %312 = vrsqrt.f32 %v233_v30 }
 0x141   :  { %v313_v35 = vpop.eup %312 }
 0x142   :  { %v235_v36 = vmul.f32 %v313_v35, %v232_v33 }
 0x144   :  { %v240_v37 = vrot.slane %v235_v36, %v239_v34 }
 0x146   :  { %v242_v39 = vmul.f32 %v240_v37, %v223_v21 }
 0x148   :  { %v250_v40 = vadd.f32 %v277_v38, %v242_v39 }
 0x14a   :  { %v278_v41 = vmul.f32 -1.442695, %v250_v40 }
 0x14c   :  { %314 = vpow2.f32 %v278_v41 }
 0x156   :  { %v315_v42 = vpop.eup %314 }
 0x157   :  { %v254_v43 = vadd.f32 1.0, %v315_v42 }
 0x159   :  { %316 = vrcp.f32 %v254_v43 }
 0x163   :  { %v317_v44 = vpop.eup %316 }
 0x164   :  { %258 = vst.msk [vmem:[#allocation8] sm:$0xff] %vm257_vm3, %v317_v44 }
 0x165   :  { %395 = shalt.err (!%p392_p0)
}
 0x166   :  { %s396_s16 = scalar_lea.hbm %s519_s6, 128 }
 0x167   :  { %p397_p1 = scmp.ne.s32.totalorder %s519_s6, %s396_s16  ;;  %p400_p2 = scmp.lt.u32.totalorder %s396_s16, %s519_s6 }
 0x169   :  { %p402_p3 = pnand %p400_p2, %p397_p1 }
 0x16b   :  { %405 = shalt.err (!%p402_p3)
}
 0x16c   :  { %268 = dma.vmem_to_hbm [thread:$0]  %s266_s14, 128, %s519_s6, [#allocation4]  }
 0x16d   :  { %410 = dma.done.wait [#allocation4], 128  }
 0x16e   :  { %411 = vsyncadd [#allocation4], 4294967168 }
 0x16f   :  { %272 = vsyncpa [#allocation3], 1 }
 0x170   :  { %273 = vsyncpa [#allocation6], 1 }
 0x171   :  { %274 = vsyncpa [#allocation4], 1 }

</bundles_post_ra>
